<compile_context>
chip_gen: v7x
topology: tpu7x:2x2x1
jax: 0.10.0
libtpu: 0.0.40
codegen_flags: <defaults>
</compile_context>

<pallas_src>
import functools

import jax
import jax.numpy as jnp
from jax.experimental import pallas as pl
from jax.experimental.pallas import tpu as pltpu


_TM_MAX = 256
_TN_MAX = 256
_TK_MAX = 256


def _round_up(v, m):
    return ((v + m - 1) // m) * m


# ----------------------------------------------------------------------------
# Quantiser math (host/XLA side — hoisted out of the Pallas kernel)
# ----------------------------------------------------------------------------
def _quant_params(t, n_bits):
    """Per-tensor symmetric scale (f32) and its reciprocal."""
    n_levels = 2 ** (n_bits - 1)
    amax = jnp.max(jnp.abs(t.astype(jnp.float32)))
    delta = jnp.maximum(amax / (n_levels - 1), 1e-8)
    return delta, 1.0 / delta


def _quantize_int(t, n_bits):
    """Integer-valued codes (clipped), plus delta / inv_delta."""
    n_levels = 2 ** (n_bits - 1)
    delta, inv_delta = _quant_params(t, n_bits)
    codes = jnp.clip(jnp.round(t.astype(jnp.float32) * inv_delta),
                     -n_levels, n_levels - 1)
    return codes, delta, inv_delta


def _fake_quant(t, n_bits):
    codes, delta, _ = _quantize_int(t, n_bits)
    return (codes * delta).astype(t.dtype)


# ----------------------------------------------------------------------------
# Pallas kernel: tiled matmul + in-kernel act quant + fused scale/bias epilogue
# ----------------------------------------------------------------------------
def _qlinear_kernel(scale_ref, x_ref, w_ref, b_ref, o_ref, acc_ref, *,
                    act_quant, n_bits_a, cast_bf16):
    k = pl.program_id(2)

    @pl.when(k == 0)
    def _():
        acc_ref[...] = jnp.zeros_like(acc_ref)

    x = x_ref[...]                                   # (tm, tk)
    if act_quant:
        # Only round/clip/mul here; the scale was prefetched into SMEM.
        n_levels = 2 ** (n_bits_a - 1)
        inv_delta_a = scale_ref[0, 0]
        x = jnp.clip(jnp.round(x * inv_delta_a), -n_levels, n_levels - 1)
        if cast_bf16:
            # integer codes |v| <= 128 are exact in bf16 -> full-rate MXU
            x = x.astype(jnp.bfloat16)

    # F.linear contraction: x(tm,tk) . W(tn,tk)^T -> (tm,tn), f32 accumulate
    acc_ref[...] += jax.lax.dot_general(
        x, w_ref[...],
        dimension_numbers=(((1,), (1,)), ((), ())),
        preferred_element_type=jnp.float32,
    )

    @pl.when(k == pl.num_programs(2) - 1)
    def _():
        out_scale = scale_ref[0, 1]                  # folded delta_a*delta_w (or 1)
        out = acc_ref[...] * out_scale + b_ref[...].astype(jnp.float32)
        o_ref[...] = out.astype(o_ref.dtype)


def _pallas_quant_linear(x, w, b2d, scales, out_dtype, *,
                         act_quant, n_bits_a, cast_bf16):
    B, K = x.shape
    N = w.shape[0]

    tm = min(_TM_MAX, _round_up(B, 8))
    tn = min(_TN_MAX, _round_up(N, 128))    # lane-dense output blocks
    tk = min(_TK_MAX, _round_up(K, 128))
    Mp, Np, Kp = _round_up(B, tm), _round_up(N, tn), _round_up(K, tk)

    # Zero padding: contributes 0 to the matmul, sliced off at the end.
    if (Mp, Kp) != (B, K):
        x = jnp.pad(x, ((0, Mp - B), (0, Kp - K)))
    if (Np, Kp) != (N, K):
        w = jnp.pad(w, ((0, Np - N), (0, Kp - K)))
    if Np != N:
        b2d = jnp.pad(b2d, ((0, 0), (0, Np - N)))

    grid = (Mp // tm, Np // tn, Kp // tk)

    kernel = functools.partial(_qlinear_kernel, act_quant=act_quant,
                               n_bits_a=n_bits_a, cast_bf16=cast_bf16)

    out = pl.pallas_call(
        kernel,
        out_shape=jax.ShapeDtypeStruct((Mp, Np), out_dtype),
        grid_spec=pltpu.PrefetchScalarGridSpec(
            num_scalar_prefetch=0,
            grid=grid,
            in_specs=[
                pl.BlockSpec(memory_space=pltpu.MemorySpace.SMEM),  # scales (1,2)
                pl.BlockSpec((tm, tk), lambda i, j, k: (i, k)),     # x
                pl.BlockSpec((tn, tk), lambda i, j, k: (j, k)),     # W
                pl.BlockSpec((1, tn), lambda i, j, k: (0, j)),      # bias
            ],
            out_specs=pl.BlockSpec((tm, tn), lambda i, j, k: (i, j)),
            scratch_shapes=[pltpu.VMEM((tm, tn), jnp.float32)],
        ),
        compiler_params=pltpu.CompilerParams(
            dimension_semantics=("parallel", "parallel", "arbitrary"),
            vmem_limit_bytes=32 * 1024 * 1024,
        ),
    )(scales, x, w, b2d)
    return out[:B, :N]


# ----------------------------------------------------------------------------
# Module wrapper (JAX analogue of QuantWrapper(nn.Linear(...)))
# ----------------------------------------------------------------------------
class QuantWrapperPallas:
    def __init__(self, in_features, out_features, *,
                 n_bits_w=8, n_bits_a=8, key=None, dtype=jnp.float32):
        key = jax.random.PRNGKey(0) if key is None else key
        kw, kb = jax.random.split(key)
        bound = 1.0 / (in_features ** 0.5)
        self.weight = jax.random.uniform(
            kw, (out_features, in_features), dtype, -bound, bound)
        self.bias = jax.random.uniform(kb, (out_features,), dtype, -bound, bound)
        self.n_bits_w = n_bits_w
        self.n_bits_a = n_bits_a
        self.use_weight_quant = False
        self.use_act_quant = False
        self._w_codes_cache = None   # (bf16 integer codes, delta_w)
        self._w_dequant_cache = None

    def set_use_quant(self, use_weight_quant=False, use_act_quant=False):
        self.use_weight_quant = use_weight_quant
        self.use_act_quant = use_act_quant

    # Weight quantisation is static across calls -> compute once, cache.
    def _weight_codes(self):
        if self._w_codes_cache is None:
            codes, delta_w, _ = _quantize_int(self.weight, self.n_bits_w)
            self._w_codes_cache = (codes.astype(jnp.bfloat16), delta_w)
        return self._w_codes_cache

    def _weight_dequant(self):
        if self._w_dequant_cache is None:
            self._w_dequant_cache = _fake_quant(self.weight, self.n_bits_w)
        return self._w_dequant_cache

    def __call__(self, x):
        out_f = self.weight.shape[0]
        use_wq, use_aq = self.use_weight_quant, self.use_act_quant

        if use_aq:
            delta_a, inv_delta_a = _quant_params(x, self.n_bits_a)
        else:
            delta_a = jnp.float32(1.0)
            inv_delta_a = jnp.float32(1.0)

        if use_wq and use_aq:
            # both quantised: bf16 integer codes on the MXU, scales folded into output
            w_in, delta_w = self._weight_codes()
            out_scale = delta_a * delta_w
            cast_bf16 = True
        elif use_wq:
            w_in = self._weight_dequant()      # pre-dequantised f32 weight
            out_scale = jnp.float32(1.0)
            cast_bf16 = False
        elif use_aq:
            w_in = self.weight                 # f32 weight; act codes scaled at output
            out_scale = delta_a
            cast_bf16 = False
        else:
            w_in = self.weight
            out_scale = jnp.float32(1.0)
            cast_bf16 = False

        scales = jnp.stack([
            jnp.asarray(inv_delta_a, jnp.float32),
            jnp.asarray(out_scale, jnp.float32),
        ]).reshape(1, 2)

        b2d = self.bias.reshape(1, out_f).astype(jnp.float32)

        return _pallas_quant_linear(
            x, w_in, b2d, scales, x.dtype,
            act_quant=use_aq, n_bits_a=self.n_bits_a, cast_bf16=cast_bf16)


# ----------------------------------------------------------------------------
# Pure-JAX reference of QuantWrapper.forward (Linear case)
# ----------------------------------------------------------------------------
def _reference(x, w, b, n_bits_w, n_bits_a, use_wq, use_aq):
    if use_wq:
        w = _fake_quant(w, n_bits_w)
    if use_aq:
        x = _fake_quant(x, n_bits_a)
    out = jax.lax.dot_general(
        x, w, dimension_numbers=(((1,), (1,)), ((), ())),
        precision=jax.lax.Precision.HIGHEST,
        preferred_element_type=jnp.float32)
    return (out + b).astype(x.dtype)


if __name__ == "__main__":
    key = jax.random.PRNGKey(0)
    k_x, k_mod = jax.random.split(key)

    batch, in_features, out_features = 16, 384, 128
    x = jax.random.normal(k_x, (batch, in_features), jnp.float32)

    mod = QuantWrapperPallas(in_features, out_features,
                             n_bits_w=8, n_bits_a=8, key=k_mod)

    # Path 1: weight + activation fake-quant enabled (main QuantWrapper mode).
    mod.set_use_quant(use_weight_quant=True, use_act_quant=True)
    out_q = jax.block_until_ready(mod(x))
    ref_q = _reference(x, mod.weight, mod.bias, mod.n_bits_w, mod.n_bits_a,
                       True, True)
    assert out_q.shape == (batch, out_features)
    assert jnp.allclose(out_q, ref_q, atol=1e-4, rtol=1e-4), "quant path mismatch"

    # Path 2: quantisation disabled (plain linear through the same kernel).
    mod.set_use_quant(use_weight_quant=False, use_act_quant=False)
    out_fp = jax.block_until_ready(mod(x))
    ref_fp = _reference(x, mod.weight, mod.bias, mod.n_bits_w, mod.n_bits_a,
                        False, False)
    assert jnp.allclose(out_fp, ref_fp, atol=1e-2, rtol=1e-3), "fp path mismatch"

    print("KERNEL_OK")
</pallas_src>

<mosaic_0001>
module attributes {stable_mosaic.version = 11 : i64} {
  func.func @_qlinear_kernel(%arg0: i32, %arg1: i32, %arg2: i32, %arg3: memref<1x2xf32, #tpu.memory_space<smem>>, %arg4: memref<16x256xf32, #tpu.memory_space<vmem>>, %arg5: memref<128x256xbf16, #tpu.memory_space<vmem>>, %arg6: memref<1x128xf32, #tpu.memory_space<vmem>>, %arg7: memref<16x128xf32, #tpu.memory_space<vmem>>, %arg8: memref<16x128xf32, #tpu.memory_space<vmem>>) attributes {dimension_semantics = [#tpu.dimension_semantics<parallel>, #tpu.dimension_semantics<parallel>, #tpu.dimension_semantics<arbitrary>], iteration_bounds = array<i64: 1, 1, 2>, scalar_prefetch = 0 : i64, scratch_operands = 1 : i64, tpu.core_type = #tpu.core_type<tc>, window_params = [{transform_indices = @transform_0, window_bounds = array<i64: 1, 2>}, {transform_indices = @transform_1, window_bounds = array<i64: 16, 256>}, {transform_indices = @transform_2, window_bounds = array<i64: 128, 256>}, {transform_indices = @transform_3, window_bounds = array<i64: 1, 128>}, {transform_indices = @transform_4, window_bounds = array<i64: 16, 128>}]} {
    %c0_i32 = arith.constant 0 : i32
    %0 = arith.cmpi eq, %arg2, %c0_i32 : i32
    %1 = arith.extui %0 : i1 to i32
    %c0_i32_0 = arith.constant 0 : i32
    %2 = arith.cmpi ne, %1, %c0_i32_0 : i32
    scf.if %2 {
      %cst_11 = arith.constant 0.000000e+00 : f32
      %23 = vector.broadcast %cst_11 : f32 to vector<16x128xf32>
      %c0_12 = arith.constant 0 : index
      %c0_13 = arith.constant 0 : index
      %24 = vector.load %arg8[%c0_12, %c0_13] : memref<16x128xf32, #tpu.memory_space<vmem>>, vector<16x128xf32>
      tpu.vector_store %arg8[%c0_12, %c0_13], %23 {strides = array<i32>} : memref<16x128xf32, #tpu.memory_space<vmem>>, vector<16x128xf32>,
    } else {
    }
    %c0 = arith.constant 0 : index
    %c0_1 = arith.constant 0 : index
    %3 = vector.load %arg4[%c0, %c0_1] : memref<16x256xf32, #tpu.memory_space<vmem>>, vector<16x256xf32>
    %c0_2 = arith.constant 0 : index
    %c0_3 = arith.constant 0 : index
    %4 = memref.load %arg3[%c0_2, %c0_3] : memref<1x2xf32, #tpu.memory_space<smem>>
    %5 = vector.broadcast %4 : f32 to vector<16x256xf32>
    %6 = arith.mulf %3, %5 : vector<16x256xf32>
    %7 = math.roundeven %6 : vector<16x256xf32>
    %c-128_i32 = arith.constant -128 : i32
    %c127_i32 = arith.constant 127 : i32
    %8 = arith.sitofp %c-128_i32 : i32 to f32
    %9 = vector.broadcast %8 : f32 to vector<16x256xf32>
    %10 = arith.maximumf %9, %7 : vector<16x256xf32>
    %11 = arith.sitofp %c127_i32 : i32 to f32
    %12 = vector.broadcast %11 : f32 to vector<16x256xf32>
    %13 = arith.minimumf %12, %10 : vector<16x256xf32>
    %14 = arith.truncf %13 : vector<16x256xf32> to vector<16x256xbf16>
    %c0_4 = arith.constant 0 : index
    %c0_5 = arith.constant 0 : index
    %15 = vector.load %arg8[%c0_4, %c0_5] : memref<16x128xf32, #tpu.memory_space<vmem>>, vector<16x128xf32>
    %c0_6 = arith.constant 0 : index
    %c0_7 = arith.constant 0 : index
    %16 = vector.load %arg5[%c0_6, %c0_7] : memref<128x256xbf16, #tpu.memory_space<vmem>>, vector<128x256xbf16>
    %cst = arith.constant dense<0.000000e+00> : vector<16x128xf32>
    %17 = tpu.matmul %14, %16, %cst {dimension_numbers = #tpu.dot_dimension_numbers<[1], [1], [0], [0], [0, 0, 1, 0], [], []>} : vector<16x256xbf16>, vector<128x256xbf16>, vector<16x128xf32> -> vector<16x128xf32>
    %18 = arith.addf %15, %17 : vector<16x128xf32>
    %c0_8 = arith.constant 0 : index
    %c0_9 = arith.constant 0 : index
    %19 = vector.load %arg8[%c0_8, %c0_9] : memref<16x128xf32, #tpu.memory_space<vmem>>, vector<16x128xf32>
    tpu.vector_store %arg8[%c0_8, %c0_9], %18 {strides = array<i32>} : memref<16x128xf32, #tpu.memory_space<vmem>>, vector<16x128xf32>,
    %c1_i32 = arith.constant 1 : i32
    %20 = arith.cmpi eq, %arg2, %c1_i32 : i32
    %21 = arith.extui %20 : i1 to i32
    %c0_i32_10 = arith.constant 0 : i32
    %22 = arith.cmpi ne, %21, %c0_i32_10 : i32
    scf.if %22 {
      %c0_11 = arith.constant 0 : index
      %c1 = arith.constant 1 : index
      %23 = memref.load %arg3[%c0_11, %c1] : memref<1x2xf32, #tpu.memory_space<smem>>
      %c0_12 = arith.constant 0 : index
      %c0_13 = arith.constant 0 : index
      %24 = vector.load %arg8[%c0_12, %c0_13] : memref<16x128xf32, #tpu.memory_space<vmem>>, vector<16x128xf32>
      %25 = vector.broadcast %23 : f32 to vector<16x128xf32>
      %26 = arith.mulf %24, %25 : vector<16x128xf32>
      %c0_14 = arith.constant 0 : index
      %c0_15 = arith.constant 0 : index
      %27 = vector.load %arg6[%c0_14, %c0_15] : memref<1x128xf32, #tpu.memory_space<vmem>>, vector<1x128xf32>
      %28 = vector.broadcast %27 : vector<1x128xf32> to vector<16x128xf32>
      %29 = arith.addf %26, %28 : vector<16x128xf32>
      %c0_16 = arith.constant 0 : index
      %c0_17 = arith.constant 0 : index
      %30 = vector.load %arg7[%c0_16, %c0_17] : memref<16x128xf32, #tpu.memory_space<vmem>>, vector<16x128xf32>
      tpu.vector_store %arg7[%c0_16, %c0_17], %29 {strides = array<i32>} : memref<16x128xf32, #tpu.memory_space<vmem>>, vector<16x128xf32>,
    } else {
    }
    return
  }
  func.func @transform_0(%arg0: i32, %arg1: i32, %arg2: i32) -> (i32, i32) {
    %c0_i32 = arith.constant 0 : i32
    %c0_i32_0 = arith.constant 0 : i32
    %c0_i32_1 = arith.constant 0 : i32
    return %c0_i32, %c0_i32_0 : i32, i32
  }
  func.func @transform_1(%arg0: i32, %arg1: i32, %arg2: i32) -> (i32, i32) {
    %c0_i32 = arith.constant 0 : i32
    return %arg0, %arg2 : i32, i32
  }
  func.func @transform_2(%arg0: i32, %arg1: i32, %arg2: i32) -> (i32, i32) {
    %c0_i32 = arith.constant 0 : i32
    return %arg1, %arg2 : i32, i32
  }
  func.func @transform_3(%arg0: i32, %arg1: i32, %arg2: i32) -> (i32, i32) {
    %c0_i32 = arith.constant 0 : i32
    %c0_i32_0 = arith.constant 0 : i32
    return %c0_i32, %arg1 : i32, i32
  }
  func.func @transform_4(%arg0: i32, %arg1: i32, %arg2: i32) -> (i32, i32) {
    %c0_i32 = arith.constant 0 : i32
    return %arg0, %arg1 : i32, i32
  }
}

</mosaic_0001>

<bundles_post_ra>
// kernel: tpu_custom_call.1
= control target key start
LH: loop header
LB: loop body
LE: loop exit
PB: predicated region body
PF: predicated region fallthrough
CT: control target
= control target key end

     0   :  { %s1243_s0 = inlined_call_operand.hbm [shape: f32[1,2], index: 0, kind: input, shape index: {}]   ;;  %s1244_s1 = inlined_call_operand.hbm [shape: f32[16,512], index: 1, kind: input, shape index: {}]   ;;  %s1245_s2 = inlined_call_operand.hbm [shape: bf16[128,512], index: 2, kind: input, shape index: {}]   ;;  %s1246_s3 = inlined_call_operand.vmem [shape: f32[1,128], index: 3, kind: input, shape index: {}]   ;;  %s1247_s4 = inlined_call_operand.hbm [shape: f32[16,128], index: 4, kind: output, shape index: {}]  }
   0x1   :  { %1252 = sst [smem:[#allocation15_spill]] %s1243_s0 }
   0x2   :  { %9 = vsyncpa [#allocation6], 0 }
   0x3   :  { %10 = vsyncpa [#allocation4], 0 }
   0x4   :  { %12 = vsyncpa [#allocation4 + $0x1], 0 }
   0x5   :  { %13 = vsyncpa [#allocation9], 0 }
   0x6   :  { %15 = vsyncpa [#allocation9 + $0x1], 0 }
   0x7   :  { %16 = vsyncpa [#allocation5], 0  ;;  %s993_s15 = smov 0   ;;  %s995_s16 = smov 0  }
   0x8   :  { %s997_s17 = smov 0   ;;  %s999_s18 = smov 0  }
   0x9   :  { %s1001_s19 = smov 0   ;;  %s1003_s20 = smov 0  }
   0xa LB: > { %s1251_s21 = sadd.s32 4294967295, %s954_s20   ;;  %s71_s22 = sadd.s32 1, %s942_s17  ;;  %s954_s20 = sphi %s1003_s20, %s22_s20   ;;  %s950_s19 = sphi %s1001_s19, %s1266_s19   ;;  %s946_s18 = sphi %s999_s18, %s1265_s18   ;;  %s942_s17 = sphi %s997_s17, %s1264_s17   ;;  %s938_s16 = sphi %s995_s16, %s1263_s16   ;;  %s934_s15 = sphi %s993_s15, %s1262_s15  }
   0xb   : > { %p78_p0 = scmp.ne.s32.totalorder %s942_s17, %s938_s16  ;;  %p79_p1 = scmp.eq.s32.totalorder %s954_s20, 0 }
   0xc   : > { %p84_p2 = scmp.ne.s32.totalorder %s938_s16, %s934_s15  ;;  %p1029_p3 = scmp.eq.s32.totalorder %s1251_s21, 0 }
   0xd   : > { %p80_p4 = por %p79_p1, %p78_p0  ;;  %p639_p5 = scmp.ge.s32.totalorder %s954_s20, 1 }
   0xe   : > { %s1253_s23 = scalar_select %p1029_p3, 1, 0 }
   0xf   : > { %p1036_p6 = por %p1029_p3, %p84_p2  ;;  %p177_p7 = scmp.lt.s32.totalorder %s954_s20, 3 }
  0x10   : > { %p707_p9 = scmp.lt.s32.totalorder %s954_s20, 2  ;;  %s34_s27 = sadd.s32 1, %s950_s19 }
  0x11   : > { %s1254_s24 = scalar_select %p1036_p6, 1, 0 }
  0x12   : > { %p1041_p8 = pnand %p639_p5, %p177_p7  ;;  %p1048_p11 = pnand %p707_p9, %p80_p4 }
  0x13   : > { %p35_p13 = scmp.ge.s32.totalorder %s34_s27, 2  ;;  %s1056_s28 = sand.u32 1, %s942_s17  }
  0x14   : > { %p695_p10 = pneg %p1041_p8  ;;  %s1257_s0 = sld [smem:[#allocation15_spill]] }
  0x16   : > { %p696_p12 = pnand %p695_p10, %p1029_p3 }
  0x18   : > { %p795_p1 = pneg %p696_p12 }
  0x1a   : > { %s793_s5 = scalar_lea.hbm %s1257_s0, 16 }
  0x1b   : > { %p794_p0 = scmp.ne.s32.totalorder %s1257_s0, %s793_s5  ;;  %p800_p5 = scmp.lt.u32.totalorder %s793_s5, %s1257_s0 }
  0x1d   : > { %p796_p2 = pnand %p795_p1, %p794_p0 }
  0x1f   : > { %p797_p4 = pneg %p796_p2 }
  0x21   : > { %p802_p7 = pnand %p800_p5, %p797_p4 }
  0x23   : > { %805 = shalt.err (!%p802_p7)
}
  0x24   : > { %s956_s10 = smov [#allocation3]   ;;  %s1268_s27 = smov (%p35_p13, %s34_s27), 0 }
  0x25   : > { %698 = dma.hbm_to_smem (!%p696_p12), %s1257_s0, 16, %s956_s10, [#allocation6]  }
  0x26   : > { %s643_s13 = sshll.u32 %s1056_s28, 5  ;;  %s677_s14 = sshll.u32 %s950_s19, 8 }
  0x27   : > { %s67_s15 = ssub.s32 %s950_s19, %s1268_s27  ;;  %s1079_s5 = scalar_lea.hbm %s1244_s1, %s677_s14 }
  0x28   : > { %p69_p9 = scmp.eq.s32.totalorder %s67_s15, 0  ;;  %s209_s6 = scalar_lea.vmem [#allocation7], %s643_s13 }
  0x29   : > { %s219_s7 = sshll.u32 %s209_s6, 4  ;;  %s206_s9 = scalar_lea.sflag [#allocation4], %s1056_s28  ;;  %s1086_s7 = int_to_ptr.vmem [resolvable:$true] %s219_s7 }
  0x2a   : > { %s1084_s8 = scalar_select %p69_p9, %s942_s17, %s71_s22  }
  0x2b   : > { %s806_s10 = scalar_lea.hbm %s1079_s5, 512  ;;  %p808_p12 = pneg %p1048_p11 }
  0x2c   : > { %p807_p10 = scmp.ne.s32.totalorder %s1079_s5, %s806_s10  ;;  %s811_s14 = scalar_lea.hbm %s1244_s1, 1024 }
  0x2d   : > { %p812_p1 = scmp.lt.u32.totalorder %s1079_s5, %s1244_s1  ;;  %p813_p2 = scmp.lt.u32.totalorder %s811_s14, %s806_s10 }
  0x2e   : > { %p809_p13 = pnand %p808_p12, %p807_p10  ;;  %p815_p5 = scmp.lt.u32.totalorder %s806_s10, %s1079_s5 }
  0x2f   : > { %p814_p4 = por %p813_p2, %p812_p1 }
  0x30   : > { %p810_p0 = pneg %p809_p13 }
  0x31   : > { %p816_p7 = por %p815_p5, %p814_p4 }
  0x33   : > { %p817_p9 = pnand %p816_p7, %p810_p0 }
  0x35   : > { %820 = shalt.err (!%p817_p9)
}
  0x36   : > { %s821_s22 = scalar_lea.vmem %s1086_s7, 512  ;;  %s957_s29 = smov [#allocation7]  }
  0x37   : > { %p822_p10 = scmp.ne.s32.totalorder %s1086_s7, %s821_s22  ;;  %s826_s30 = sshll.u32 %s957_s29, 4  ;;  %s827_s30 = int_to_ptr.vmem [resolvable:$false] %s826_s30 }
  0x38   : > { %s828_s6 = scalar_lea.vmem %s827_s30, 1024  ;;  %p829_p3 = scmp.lt.s32.totalorder %s1086_s7, %s827_s30 }
  0x39   : > { %p824_p13 = pnand %p822_p10, %p808_p12  ;;  %p830_p1 = scmp.lt.s32.totalorder %s828_s6, %s821_s22 }
  0x3b   : > { %p825_p6 = pneg %p824_p13  ;;  %p831_p2 = por %p830_p1, %p829_p3 }
  0x3d   : > { %p832_p4 = pnand %p831_p2, %p825_p6 }
  0x3f   : > { %835 = shalt.err (!%p832_p4)
}
  0x40   : > { %s958_s10 = smov 512   ;;  %s959_s11 = smov 256  }
  0x41   : > { %s960_s12 = smov 16   ;;  %s646_s14 = sshll.u32 %s1056_s28, 7 }
  0x42   : > { %702 = dma.hbm_to_vmem [thread:$0]  (!%p1048_p11), %s1079_s5, 512, %s1086_s7, %s206_s9, %s958_s10, %s959_s11, %s960_s12  }
  0x43   : > { %s678_s13 = sshll.u32 %s950_s19, 7  ;;  %s233_s30 = scalar_lea.vmem [#allocation8], %s646_s14 }
  0x44   : > { %s1122_s29 = scalar_lea.hbm %s1245_s2, %s678_s13  ;;  %s243_s6 = sshll.u32 %s233_s30, 4  ;;  %s1124_s6 = int_to_ptr.vmem [resolvable:$true] %s243_s6 }
  0x45   : > { %s230_s21 = scalar_lea.sflag [#allocation9], %s1056_s28  ;;  %s836_s0 = scalar_lea.hbm %s1122_s29, 2048 }
  0x46   : > { %p837_p3 = scmp.ne.s32.totalorder %s1122_s29, %s836_s0  ;;  %s841_s9 = scalar_lea.hbm %s1245_s2, 4096 }
  0x47   : > { %p842_p5 = scmp.lt.u32.totalorder %s1122_s29, %s1245_s2  ;;  %p843_p7 = scmp.lt.u32.totalorder %s841_s9, %s836_s0 }
  0x48   : > { %p839_p6 = pnand %p837_p3, %p808_p12  ;;  %p845_p10 = scmp.lt.u32.totalorder %s836_s0, %s1122_s29 }
  0x49   : > { %p844_p9 = por %p843_p7, %p842_p5 }
  0x4a   : > { %p840_p0 = pneg %p839_p6 }
  0x4b   : > { %p846_p13 = por %p845_p10, %p844_p9 }
  0x4d   : > { %p847_p1 = pnand %p846_p13, %p840_p0 }
  0x4f   : > { %850 = shalt.err (!%p847_p1)
}
  0x50   : > { %s851_s14 = scalar_lea.vmem %s1124_s6, 2048  ;;  %s961_s13 = smov [#allocation8]  }
  0x51   : > { %p852_p2 = scmp.ne.s32.totalorder %s1124_s6, %s851_s14  ;;  %s856_s15 = sshll.u32 %s961_s13, 4  ;;  %s857_s15 = int_to_ptr.vmem [resolvable:$false] %s856_s15 }
  0x52   : > { %s858_s22 = scalar_lea.vmem %s857_s15, 4096  ;;  %p859_p6 = scmp.lt.s32.totalorder %s1124_s6, %s857_s15 }
  0x53   : > { %p854_p4 = pnand %p852_p2, %p808_p12  ;;  %p860_p5 = scmp.lt.s32.totalorder %s858_s22, %s851_s14 }
  0x55   : > { %p855_p3 = pneg %p854_p4  ;;  %p861_p7 = por %p860_p5, %p859_p6 }
  0x57   : > { %p862_p9 = pnand %p861_p7, %p855_p3 }
  0x59   : > { %865 = shalt.err (!%p862_p9)
}
  0x5a   : > { %s962_s0 = smov 128   ;;  %s963_s30 = smov 8  }
  0x5b   : > { %705 = dma.hbm_to_vmem [thread:$0]  (!%p1048_p11), %s1122_s29, 2048, %s1124_s6, %s230_s21, %s959_s11, %s962_s0, %s963_s30  }
  0x5c   : > { %255 = sbr.rel (%p1041_p8) target bundleno = 438 (0x1b6), region = 36  ;;  %p1258_p12 = scmp.ne.s32.totalorder (!%p1041_p8), %s1253_s23, 0 }
  0x63   : > { %917 = dma.done.wait (%p1258_p12), [#allocation6], 16  }
  0x64   : > { %919 = vsyncadd (%p1258_p12), [#allocation6], 4294967280  ;;  %s261_s5 = sand.u32 1, %s938_s16   ;;  %p1259_p0 = scmp.ne.s32.totalorder %s1254_s24, 0 }
  0x65   : > { %s651_s7 = sshll.u32 %s261_s5, 5  ;;  %s262_s9 = scalar_lea.sflag [#allocation4], %s261_s5 }
  0x66   : > { %s1160_s10 = scalar_lea.vmem [#allocation7], %s651_s7 }
  0x67   : > { %921 = dma.done.wait (%p1259_p0), %s262_s9, 512  }
  0x68   : > { %923 = vsyncadd (%p1259_p0), %s262_s9, 4294966784  ;;  %s652_s21 = sshll.u32 %s261_s5, 7  ;;  %s271_s25 = scalar_lea.sflag [#allocation9], %s261_s5 }
  0x69   : > { %s1166_s26 = scalar_lea.vmem [#allocation8], %s652_s21 }
  0x6a   : > { %925 = dma.done.wait (%p1259_p0), %s271_s25, 2048  }
  0x6b   : > { %927 = vsyncadd (%p1259_p0), %s271_s25, 4294965248 }
  0x6c   : > { %279 = sfence }
  0x6d   : > { %p653_p8 = scmp.ne.s32.totalorder %s946_s18, 0 }
  0x6e   : > { %v964_v0 = vmov (!%p653_p8), 0.0  }
  0x6f   : > { %315 = sbr.rel (%p653_p8) target bundleno = 118 (0x76), region = 52  ;;  %316 = vst [vmem:[#allocation2] sm:$0xff] (!%p653_p8), %v964_v0  ;;  %317 = vst [vmem:[#allocation2 + $0x8] sm:$0xff] (!%p653_p8), %v964_v0 }
  0x76 PF: > { %v769_v1 = vld [vmem:[%s1166_s26 + $0x4] ss:$8 sps:$4 sm:$0xff]   ;;  %s322_s23 = sld [smem:[#allocation3]]  ;;  %v771_v2 = vld [vmem:[%s1166_s26] ss:$8 sps:$4 sm:$0xff]   ;;  %v321_v8 = vld [vmem:[%s1160_s10 + $0x18] sm:$0xff] }
  0x77   : > { %440 = vmatprep.subr.bf16.mxu0 %v769_v1  ;;  %v772_v3 = vld [vmem:[%s1166_s26 + $0x14] ss:$8 sps:$4 sm:$0xff]   ;;  %v774_v4 = vld [vmem:[%s1166_s26 + $0x10] ss:$8 sps:$4 sm:$0xff]   ;;  %v775_v5 = vld [vmem:[%s1166_s26 + $0x24] ss:$8 sps:$4 sm:$0xff]  }
  0x78   : > { %441 = vmatpush1.bf16.xpose.msra.mxu0 %v771_v2  ;;  %v319_v7 = vld [vmem:[%s1160_s10 + $0x8] sm:$0xff]  ;;  %v778_v15 = vld [vmem:[%s1166_s26 + $0x34] ss:$8 sps:$4 sm:$0xff]   ;;  %v780_v20 = vld [vmem:[%s1166_s26 + $0x30] ss:$8 sps:$4 sm:$0xff]   ;;  %p670_p11 = scmp.ne.s32.totalorder %s946_s18, 1 }
  0x79   : > { %442 = vmatprep.subr.bf16.mxu0 %v772_v3  ;;  %v777_v13 = vld [vmem:[%s1166_s26 + $0x20] ss:$8 sps:$4 sm:$0xff]   ;;  %v781_v21 = vld [vmem:[%s1166_s26 + $0x44] ss:$8 sps:$4 sm:$0xff]   ;;  %v784_v23 = vld [vmem:[%s1166_s26 + $0x54] ss:$8 sps:$4 sm:$0xff]  }
  0x7a   : > { %v783_v22 = vld [vmem:[%s1166_s26 + $0x40] ss:$8 sps:$4 sm:$0xff]   ;;  %v786_v24 = vld [vmem:[%s1166_s26 + $0x50] ss:$8 sps:$4 sm:$0xff]   ;;  %v787_v25 = vld [vmem:[%s1166_s26 + $0x64] ss:$8 sps:$4 sm:$0xff]  }
  0x7b   : > { %v318_v26 = vld [vmem:[%s1160_s10] sm:$0xff]  ;;  %v320_v27 = vld [vmem:[%s1160_s10 + $0x10] sm:$0xff]  ;;  %v343_v42 = vld [vmem:[#allocation2 + $0x8] sm:$0xff]  ;;  %s671_s24 = sld [smem:[#allocation3 + $0x1]] (!%p670_p11) }
  0x7c   : > { %v323_v6 = vstv %s322_s23  ;;  %v789_v30 = vld [vmem:[%s1166_s26 + $0x60] ss:$8 sps:$4 sm:$0xff]   ;;  %v790_v31 = vld [vmem:[%s1166_s26 + $0x74] ss:$8 sps:$4 sm:$0xff]   ;;  %v792_v36 = vld [vmem:[%s1166_s26 + $0x70] ss:$8 sps:$4 sm:$0xff]  }
  0x7d   : > { %v325_v9 = vmul.f32 %v323_v6, %v319_v7  ;;  %v327_v10 = vmul.f32 %v323_v6, %v321_v8  ;;  %v324_v28 = vmul.f32 %v323_v6, %v318_v26  ;;  %v326_v29 = vmul.f32 %v323_v6, %v320_v27  ;;  %v342_v40 = vld [vmem:[#allocation2] sm:$0xff] }
  0x7e   : > { %v672_v51 = vld [vmem:[%s1246_s3] ss:$0 sm:$0xff] (!%p670_p11) }
  0x7f   : > { %v680_v11 = vround.rtne.f32 %v325_v9  ;;  %v682_v12 = vround.rtne.f32 %v327_v10  ;;  %v679_v32 = vround.rtne.f32 %v324_v28  ;;  %v681_v33 = vround.rtne.f32 %v326_v29 }
  0x80   : > { %443 = vmatpush1.bf16.xpose.msra.mxu0 %v774_v4 }
  0x81   : > { %444 = vmatprep.subr.bf16.mxu0 %v775_v5  ;;  %v333_v14 = vmax.f32 %v680_v11, -128.0  ;;  %v335_v16 = vmax.f32 %v682_v12, -128.0  ;;  %v332_v34 = vmax.f32 %v679_v32, -128.0  ;;  %v334_v35 = vmax.f32 %v681_v33, -128.0 }
  0x82   : > { %v492_v50 = vstv (!%p670_p11), %s671_s24 }
  0x83   : > { %v337_v17 = vmin.f32 %v333_v14, 127.0  ;;  %v339_v18 = vmin.f32 %v335_v16, 127.0  ;;  %v336_v37 = vmin.f32 %v332_v34, 127.0  ;;  %v338_v38 = vmin.f32 %v334_v35, 127.0 }
  0x85   : > { %v341_v19 = vpack.c.bf16 %v339_v18, %v337_v17  ;;  %v340_v39 = vpack.c.bf16 %v338_v38, %v336_v37 }
  0x87   : > { %472 = vmatprep.mubr.bf16.mxu0 %v341_v19 }
  0x88   : > { %445 = vmatpush1.bf16.xpose.msra.mxu0 %v777_v13 }
  0x89   : > { %446 = vmatprep.subr.bf16.mxu0 %v778_v15 }
  0x90   : > { %447 = vmatpush1.bf16.xpose.msra.mxu0 %v780_v20 }
  0x91   : > { %448 = vmatprep.subr.bf16.mxu0 %v781_v21 }
  0x98   : > { %449 = vmatpush1.bf16.xpose.msra.mxu0 %v783_v22 }
  0x99   : > { %450 = vmatprep.subr.bf16.mxu0 %v784_v23 }
  0xa0   : > { %451 = vmatpush1.bf16.xpose.msra.mxu0 %v786_v24 }
  0xa1   : > { %452 = vmatprep.subr.bf16.mxu0 %v787_v25 }
  0xa8   : > { %453 = vmatpush1.bf16.xpose.msra.mxu0 %v789_v30 }
  0xa9   : > { %454 = vmatprep.subr.bf16.mxu0 %v790_v31 }
  0xb0   : > { %455 = vmatpush1.bf16.xpose.msra.mxu0 %v792_v36 }
  0xb7   : > { %473 = vmatmul.mubr.bf16.vlgmr.msra.gmra.mrb[0].mxu0 %v340_v39 }
 0x189   : > { %488 = sbr.rel (%p670_p11) target bundleno = 412 (0x19c), region = 56 }
 0x18a   : > { %v474_v41 = vpop.f32.mrb[0].mxu0 }
 0x18b   : > { %v481_v43 = vadd.f32 %v474_v41, %v342_v40  ;;  %v476_v44 = vpop.f32.mrb[1].mxu0 }
 0x18c   : > { %v477_v45 = vpop.f32.mrb[2].mxu0 }
 0x18d   : > { %483 = vst [vmem:[#allocation2] sm:$0xff] %v481_v43  ;;  %v482_v46 = vadd.f32 %v477_v45, %v343_v42  ;;  %v479_v47 = vpop.f32.mrb[3].mxu0 }
 0x18f   : > { %484 = vst [vmem:[#allocation2 + $0x8] sm:$0xff] %v482_v46 }
 0x194   : > { %v490_v48 = vld [vmem:[#allocation2] sm:$0xff] }
 0x195   : > { %v493_v52 = vmul.f32 %v492_v50, %v490_v48 }
 0x196   : > { %v491_v49 = vld [vmem:[#allocation2 + $0x8] sm:$0xff] }
 0x197   : > { %v494_v53 = vmul.f32 %v492_v50, %v491_v49  ;;  %v502_v54 = vadd.f32 %v672_v51, %v493_v52 }
 0x199   : > { %v503_v55 = vadd.f32 %v672_v51, %v494_v53  ;;  %504 = vst [vmem:[#allocation10] sm:$0xff] %v502_v54 }
 0x19b   : > { %505 = vst [vmem:[#allocation10 + $0x8] sm:$0xff] %v503_v55 }
 0x19c PF: > { %s1260_s29 = sadd.s32 4294967295, %s954_s20   ;;  %s965_s6 = smov [#allocation10]  }
 0x19d   : > { %p1199_p10 = scmp.eq.s32.totalorder %s1260_s29, 1  ;;  %s516_s12 = sshll.u32 %s965_s6, 4  ;;  %s517_s12 = int_to_ptr.vmem [resolvable:$true] %s516_s12 }
 0x19e   : > { %s866_s14 = scalar_lea.vmem %s517_s12, 256  ;;  %p873_p4 = scmp.lt.s32.totalorder %s517_s12, %s517_s12 }
 0x19f   : > { %p867_p13 = scmp.ne.s32.totalorder %s517_s12, %s866_s14  ;;  %p874_p3 = scmp.lt.s32.totalorder %s866_s14, %s866_s14 }
 0x1a1   : > { %p868_p1 = pnand %p867_p13, %p1199_p10  ;;  %p875_p6 = por %p874_p3, %p873_p4 }
 0x1a3   : > { %p869_p2 = pneg %p868_p1 }
 0x1a5   : > { %p876_p5 = pnand %p875_p6, %p869_p2 }
 0x1a7   : > { %879 = shalt.err (!%p876_p5)
}
 0x1a8   : > { %s880_s22 = scalar_lea.hbm %s1247_s4, 256 }
 0x1a9   : > { %p881_p7 = scmp.ne.s32.totalorder %s1247_s4, %s880_s22  ;;  %p886_p0 = scmp.lt.u32.totalorder %s880_s22, %s1247_s4 }
 0x1ab   : > { %p882_p9 = pnand %p881_p7, %p1199_p10 }
 0x1ad   : > { %p883_p12 = pneg %p882_p9 }
 0x1af   : > { %p888_p8 = pnand %p886_p0, %p883_p12 }
 0x1b1   : > { %891 = shalt.err (!%p888_p8)
}
 0x1b2   : > { %s966_s9 = smov 128   ;;  %s967_s10 = smov 8  }
 0x1b3   : > { %692 = dma.vmem_to_hbm [thread:$0]  (%p1199_p10), %s517_s12, 256, %s1247_s4, [#allocation5], %s966_s9, %s966_s9, %s967_s10  }
 0x1b4   : > { %929 = dma.done.wait (%p1199_p10), [#allocation5], 256  }
 0x1b5   : > { %931 = vsyncadd (%p1199_p10), [#allocation5], 4294967040 }
 0x1b6 PF: > { %s22_s20 = sadd.s32 1, %s954_s20   ;;  %s1262_s15 = smov %s938_s16 }
 0x1b7   : > { %p19_p11 = scmp.ge.s32.totalorder %s22_s20, 4   ;;  %s1263_s16 = smov %s942_s17 }
 0x1b8   : > { %s1264_s17 = smov %s1084_s8  ;;  %s1265_s18 = smov %s950_s19 }
 0x1b9   : > { %s1266_s19 = smov %s1268_s27  ;;  %21 = sbr.rel (!%p19_p11) target bundleno = 10 (0xa), region = 103 }
 0x1c0   :  { %532 = vsyncpa [#allocation4], 1 }
 0x1c1   :  { %534 = vsyncpa [#allocation4 + $0x1], 1 }
 0x1c2   :  { %535 = vsyncpa [#allocation9], 1 }
 0x1c3   :  { %537 = vsyncpa [#allocation9 + $0x1], 1 }
 0x1c4   :  { %538 = vsyncpa [#allocation5], 1 }
 0x1c5   :  { %540 = vsyncpa [#allocation5 + $0x1], 1 }
 0x1c6   :  { %541 = vsyncpa [#allocation6], 1 }
 0x1c7   :  { %543 = vsyncpa [#allocation6 + $0x1], 1 }

</bundles_post_ra>
